<compile_context>
chip_gen: v5e
topology: v5e:2x2
jax: 0.10.0
libtpu: 0.0.40
codegen_flags: <defaults>
</compile_context>

<pallas_src>
import functools

import jax
import jax.numpy as jnp
from jax.experimental import pallas as pl
from jax.experimental.pallas import tpu as pltpu


def _softmax_rows(scores):
    """Row softmax of f32 scores (G, TQ, Lk); divide goes to the EUP slot."""
    m = jnp.max(scores, axis=-1, keepdims=True)
    p = jnp.exp(scores - m)
    denom = jnp.sum(p, axis=-1, keepdims=True)
    # EUP approximate reciprocal + one Newton step on the tiny (G, TQ, 1) vector.
    r = pl.reciprocal(denom, approx=True)
    r = r * (jnp.float32(2.0) - denom * r)
    return p * r


def _sdpa_kernel(q_ref, k_ref, v_ref, out_ref, attn_ref, *, inv_temp):
    # q_ref: (G, TQ, Dk)  k_ref: (G, Lk, Dk)  v_ref: (G, Lk, Dv)
    # Batched QK^T contracting the last dim of both operands: MXU-direct, no k.T.
    scores = jnp.einsum('gqd,gkd->gqk', q_ref[...], k_ref[...],
                        preferred_element_type=jnp.float32)
    scores = scores * jnp.float32(inv_temp)
    attn = _softmax_rows(scores)
    attn_ref[...] = attn.astype(attn_ref.dtype)
    out = jnp.einsum('gqk,gkd->gqd', attn.astype(v_ref.dtype), v_ref[...],
                     preferred_element_type=jnp.float32)
    out_ref[...] = out.astype(out_ref.dtype)


def _sdpa_kernel_mask(q_ref, k_ref, v_ref, mask_ref, out_ref, attn_ref, *, inv_temp):
    # mask_ref: (1, TQ, Lk) (shared across heads of a batch element) or (G, TQ, Lk).
    scores = jnp.einsum('gqd,gkd->gqk', q_ref[...], k_ref[...],
                        preferred_element_type=jnp.float32)
    scores = scores * jnp.float32(inv_temp)
    scores = jnp.where(mask_ref[...] == 0, jnp.float32(-1e9), scores)
    attn = _softmax_rows(scores)
    attn_ref[...] = attn.astype(attn_ref.dtype)
    out = jnp.einsum('gqk,gkd->gqd', attn.astype(v_ref.dtype), v_ref[...],
                     preferred_element_type=jnp.float32)
    out_ref[...] = out.astype(out_ref.dtype)


def _pick_lq_tile(lq):
    """Bound the scores tile in Lq; tiles are multiples of 128 (>= int8/bf16 tiling)."""
    if lq <= 512:
        return lq
    for t in (512, 256, 128):
        if lq % t == 0:
            return t
    return lq  # TODO(synk): ragged Lq — fall back to whole-row (fine for moderate Lq*Lk)


def _pick_head_block(h, tq, lk, dk, dv, itemsize):
    """Largest divisor of H whose per-step footprint stays well inside VMEM."""
    per_head = (tq * dk + lk * dk + lk * dv + tq * dv + tq * lk) * itemsize + tq * lk * 4
    budget = 2 * 1024 * 1024  # per grid step (Pallas double-buffers each operand)
    best = 1
    for g in range(1, h + 1):
        if h % g == 0 and g * per_head <= budget:
            best = g
    return best


def scaled_dot_product_attention(q, k, v, temperature, mask=None):
    """Pallas equivalent of ScaledDotProductAttention.forward (eval mode).

    q: (B, H, Lq, Dk), k: (B, H, Lk, Dk), v: (B, H, Lk, Dv)
    mask: optional, broadcastable to (B, H, Lq, Lk); positions where mask == 0 get -1e9.
    Returns (output, attn) with shapes (B, H, Lq, Dv), (B, H, Lq, Lk), both in q.dtype.
    """
    B, H, Lq, Dk = q.shape
    Lk = k.shape[2]
    Dv = v.shape[3]
    BH = B * H

    TQ = _pick_lq_tile(Lq)
    G = _pick_head_block(H, TQ, Lk, Dk, Dv, jnp.dtype(q.dtype).itemsize)
    n_hb = BH // G
    n_qt = Lq // TQ

    qf = q.reshape(BH, Lq, Dk)
    kf = k.reshape(BH, Lk, Dk)
    vf = v.reshape(BH, Lk, Dv)

    inv_temp = float(1.0 / temperature)

    q_spec = pl.BlockSpec((G, TQ, Dk), lambda hb, qt: (hb, qt, 0))
    k_spec = pl.BlockSpec((G, Lk, Dk), lambda hb, qt: (hb, 0, 0))
    v_spec = pl.BlockSpec((G, Lk, Dv), lambda hb, qt: (hb, 0, 0))
    out_specs = (
        pl.BlockSpec((G, TQ, Dv), lambda hb, qt: (hb, qt, 0)),
        pl.BlockSpec((G, TQ, Lk), lambda hb, qt: (hb, qt, 0)),
    )
    out_shapes = (
        jax.ShapeDtypeStruct((BH, Lq, Dv), q.dtype),
        jax.ShapeDtypeStruct((BH, Lq, Lk), q.dtype),  # attn in input dtype (matches PyTorch)
    )
    compiler_params = pltpu.CompilerParams(
        dimension_semantics=("parallel", "parallel"),
        vmem_limit_bytes=32 * 1024 * 1024,
    )

    if mask is None:
        kernel = functools.partial(_sdpa_kernel, inv_temp=inv_temp)
        in_specs = [q_spec, k_spec, v_spec]
        operands = (qf, kf, vf)
    else:
        mask = jnp.asarray(mask)
        m4 = jnp.broadcast_to(mask, jnp.broadcast_shapes(mask.shape, (B, 1, Lq, Lk)))
        if m4.shape[1] == 1:
            # Shared across heads: keep (B, Lq, Lk) int8 in HBM, reuse the block per head.
            mflat = (m4[:, 0] != 0).astype(jnp.int8)                 # (B, Lq, Lk)
            m_spec = pl.BlockSpec((1, TQ, Lk),
                                  lambda hb, qt: ((hb * G) // H, qt, 0))
        else:
            # Per-head mask: store int8, index like q.
            m_full = jnp.broadcast_to(m4, (B, H, Lq, Lk))
            mflat = (m_full != 0).astype(jnp.int8).reshape(BH, Lq, Lk)
            m_spec = pl.BlockSpec((G, TQ, Lk), lambda hb, qt: (hb, qt, 0))
        kernel = functools.partial(_sdpa_kernel_mask, inv_temp=inv_temp)
        in_specs = [q_spec, k_spec, v_spec, m_spec]
        operands = (qf, kf, vf, mflat)

    out_f, attn_f = pl.pallas_call(
        kernel,
        out_shape=out_shapes,
        grid_spec=pltpu.PrefetchScalarGridSpec(
            num_scalar_prefetch=0,
            grid=(n_hb, n_qt),
            in_specs=in_specs,
            out_specs=out_specs,
        ),
        compiler_params=compiler_params,
    )(*operands)

    output = out_f.reshape(B, H, Lq, Dv)
    attn = attn_f.reshape(B, H, Lq, Lk)
    return output, attn


def _reference_sdpa(q, k, v, temperature, mask=None):
    """Pure-JAX reference mirroring the PyTorch forward (eval mode)."""
    attn = jnp.matmul(q / temperature, jnp.swapaxes(k, 2, 3))
    if mask is not None:
        attn = jnp.where(mask == 0, jnp.float32(-1e9), attn)
    attn = jax.nn.softmax(attn, axis=-1)
    output = jnp.matmul(attn, v)
    return output, attn


if __name__ == "__main__":
    key = jax.random.PRNGKey(0)
    kq, kk, kv, km = jax.random.split(key, 4)

    B, H, Lq, Lk, Dk, Dv = 2, 4, 8, 8, 16, 16
    temperature = float(Dk) ** 0.5

    q = jax.random.normal(kq, (B, H, Lq, Dk), dtype=jnp.float32)
    k = jax.random.normal(kk, (B, H, Lk, Dk), dtype=jnp.float32)
    v = jax.random.normal(kv, (B, H, Lk, Dv), dtype=jnp.float32)
    # Deterministic mask shared across heads (1 = keep, 0 = masked out).
    mask = (jax.random.uniform(km, (B, 1, Lq, Lk)) > 0.2).astype(jnp.int32)

    # Tolerance accounts for the f32 scale-after-matmul and the EUP reciprocal path.
    ATOL = RTOL = 1e-4

    # No-mask path
    out0, attn0 = scaled_dot_product_attention(q, k, v, temperature, mask=None)
    jax.block_until_ready((out0, attn0))
    ref_out0, ref_attn0 = _reference_sdpa(q, k, v, temperature, mask=None)
    assert jnp.allclose(out0, ref_out0, atol=ATOL, rtol=RTOL)
    assert jnp.allclose(attn0, ref_attn0, atol=ATOL, rtol=RTOL)

    # Masked path (mask shared across heads — exercised via block-index reuse, no H broadcast)
    out1, attn1 = scaled_dot_product_attention(q, k, v, temperature, mask=mask)
    jax.block_until_ready((out1, attn1))
    ref_out1, ref_attn1 = _reference_sdpa(q, k, v, temperature, mask=mask)
    assert jnp.allclose(out1, ref_out1, atol=ATOL, rtol=RTOL)
    assert jnp.allclose(attn1, ref_attn1, atol=ATOL, rtol=RTOL)

    print("KERNEL_OK")
</pallas_src>

<mosaic_0001>
module attributes {stable_mosaic.version = 11 : i64} {
  func.func @_sdpa_kernel(%arg0: i32, %arg1: i32, %arg2: memref<4x8x16xf32, #tpu.memory_space<vmem>>, %arg3: memref<4x8x16xf32, #tpu.memory_space<vmem>>, %arg4: memref<4x8x16xf32, #tpu.memory_space<vmem>>, %arg5: memref<4x8x16xf32, #tpu.memory_space<vmem>>, %arg6: memref<4x8x8xf32, #tpu.memory_space<vmem>>) attributes {dimension_semantics = [#tpu.dimension_semantics<parallel>, #tpu.dimension_semantics<parallel>], iteration_bounds = array<i64: 2, 1>, scalar_prefetch = 0 : i64, scratch_operands = 0 : i64, tpu.core_type = #tpu.core_type<tc>, window_params = [{transform_indices = @transform_0, window_bounds = array<i64: 4, 8, 16>}, {transform_indices = @transform_1, window_bounds = array<i64: 4, 8, 16>}, {transform_indices = @transform_2, window_bounds = array<i64: 4, 8, 16>}, {transform_indices = @transform_3, window_bounds = array<i64: 4, 8, 16>}, {transform_indices = @transform_4, window_bounds = array<i64: 4, 8, 8>}]} {
    %c0 = arith.constant 0 : index
    %c0_0 = arith.constant 0 : index
    %c0_1 = arith.constant 0 : index
    %0 = vector.load %arg2[%c0, %c0_0, %c0_1] : memref<4x8x16xf32, #tpu.memory_space<vmem>>, vector<4x8x16xf32>
    %c0_2 = arith.constant 0 : index
    %c0_3 = arith.constant 0 : index
    %c0_4 = arith.constant 0 : index
    %1 = vector.load %arg3[%c0_2, %c0_3, %c0_4] : memref<4x8x16xf32, #tpu.memory_space<vmem>>, vector<4x8x16xf32>
    "tpu.trace_start"() <{level = 10 : i32, message = "gqd,gkd->gqk"}> : () -> ()
    %cst = arith.constant dense<0.000000e+00> : vector<4x8x8xf32>
    %2 = tpu.matmul %0, %1, %cst {dimension_numbers = #tpu.dot_dimension_numbers<[2], [2], [1], [1], [0, 0, 0, 1, 1, 1], [0], [0]>} : vector<4x8x16xf32>, vector<4x8x16xf32>, vector<4x8x8xf32> -> vector<4x8x8xf32>
    "tpu.trace_stop"() : () -> ()
    %cst_5 = arith.constant 2.500000e-01 : f32
    %3 = vector.broadcast %cst_5 : f32 to vector<4x8x8xf32>
    %4 = arith.mulf %2, %3 : vector<4x8x8xf32>
    %cst_6 = arith.constant dense<0xFF800000> : vector<4x8xf32>
    %5 = vector.multi_reduction <maximumf>, %4, %cst_6 [2] : vector<4x8x8xf32> to vector<4x8xf32>
    %6 = vector.shape_cast %5 : vector<4x8xf32> to vector<4x8x1xf32>
    %7 = vector.broadcast %6 : vector<4x8x1xf32> to vector<4x8x8xf32>
    %8 = arith.subf %4, %7 : vector<4x8x8xf32>
    %9 = math.exp %8 : vector<4x8x8xf32>
    %cst_7 = arith.constant dense<0.000000e+00> : vector<4x8xf32>
    %10 = vector.multi_reduction <add>, %9, %cst_7 [2] : vector<4x8x8xf32> to vector<4x8xf32>
    %11 = vector.shape_cast %10 : vector<4x8xf32> to vector<4x8x1xf32>
    %12 = tpu.reciprocal %11 {approx = true} : vector<4x8x1xf32> -> vector<4x8x1xf32>
    %13 = arith.mulf %11, %12 : vector<4x8x1xf32>
    %cst_8 = arith.constant 2.000000e+00 : f32
    %14 = vector.broadcast %cst_8 : f32 to vector<4x8x1xf32>
    %15 = arith.subf %14, %13 : vector<4x8x1xf32>
    %16 = arith.mulf %12, %15 : vector<4x8x1xf32>
    %17 = vector.broadcast %16 : vector<4x8x1xf32> to vector<4x8x8xf32>
    %18 = arith.mulf %9, %17 : vector<4x8x8xf32>
    %c0_9 = arith.constant 0 : index
    %c0_10 = arith.constant 0 : index
    %c0_11 = arith.constant 0 : index
    %19 = vector.load %arg6[%c0_9, %c0_10, %c0_11] : memref<4x8x8xf32, #tpu.memory_space<vmem>>, vector<4x8x8xf32>
    tpu.vector_store %arg6[%c0_9, %c0_10, %c0_11], %18 {strides = array<i32>} : memref<4x8x8xf32, #tpu.memory_space<vmem>>, vector<4x8x8xf32>,
    %c0_12 = arith.constant 0 : index
    %c0_13 = arith.constant 0 : index
    %c0_14 = arith.constant 0 : index
    %20 = vector.load %arg4[%c0_12, %c0_13, %c0_14] : memref<4x8x16xf32, #tpu.memory_space<vmem>>, vector<4x8x16xf32>
    "tpu.trace_start"() <{level = 10 : i32, message = "gqk,gkd->gqd"}> : () -> ()
    %cst_15 = arith.constant dense<0.000000e+00> : vector<4x8x16xf32>
    %21 = tpu.matmul %18, %20, %cst_15 {dimension_numbers = #tpu.dot_dimension_numbers<[2], [1], [1], [2], [0, 0, 0, 1, 1, 2], [0], [0]>} : vector<4x8x8xf32>, vector<4x8x16xf32>, vector<4x8x16xf32> -> vector<4x8x16xf32>
    "tpu.trace_stop"() : () -> ()
    %c0_16 = arith.constant 0 : index
    %c0_17 = arith.constant 0 : index
    %c0_18 = arith.constant 0 : index
    %22 = vector.load %arg5[%c0_16, %c0_17, %c0_18] : memref<4x8x16xf32, #tpu.memory_space<vmem>>, vector<4x8x16xf32>
    tpu.vector_store %arg5[%c0_16, %c0_17, %c0_18], %21 {strides = array<i32>} : memref<4x8x16xf32, #tpu.memory_space<vmem>>, vector<4x8x16xf32>,
    return
  }
  func.func @transform_0(%arg0: i32, %arg1: i32) -> (i32, i32, i32) {
    %c0_i32 = arith.constant 0 : i32
    %c0_i32_0 = arith.constant 0 : i32
    return %arg0, %arg1, %c0_i32 : i32, i32, i32
  }
  func.func @transform_1(%arg0: i32, %arg1: i32) -> (i32, i32, i32) {
    %c0_i32 = arith.constant 0 : i32
    %c0_i32_0 = arith.constant 0 : i32
    %c0_i32_1 = arith.constant 0 : i32
    return %arg0, %c0_i32, %c0_i32_0 : i32, i32, i32
  }
  func.func @transform_2(%arg0: i32, %arg1: i32) -> (i32, i32, i32) {
    %c0_i32 = arith.constant 0 : i32
    %c0_i32_0 = arith.constant 0 : i32
    %c0_i32_1 = arith.constant 0 : i32
    return %arg0, %c0_i32, %c0_i32_0 : i32, i32, i32
  }
  func.func @transform_3(%arg0: i32, %arg1: i32) -> (i32, i32, i32) {
    %c0_i32 = arith.constant 0 : i32
    %c0_i32_0 = arith.constant 0 : i32
    return %arg0, %arg1, %c0_i32 : i32, i32, i32
  }
  func.func @transform_4(%arg0: i32, %arg1: i32) -> (i32, i32, i32) {
    %c0_i32 = arith.constant 0 : i32
    %c0_i32_0 = arith.constant 0 : i32
    return %arg0, %arg1, %c0_i32 : i32, i32, i32
  }
}

</mosaic_0001>

<bundles_post_ra>
// kernel: tpu_custom_call.1
= control target key start
LH: loop header
LB: loop body
LE: loop exit
PB: predicated region body
PF: predicated region fallthrough
CT: control target
= control target key end

     0   :  { %s1411_s0 = inlined_call_operand.hbm [shape: f32[8,8,16], index: 0, kind: input, shape index: {}]   ;;  %s1412_s1 = inlined_call_operand.hbm [shape: f32[8,8,16], index: 1, kind: input, shape index: {}]   ;;  %s1413_s2 = inlined_call_operand.hbm [shape: f32[8,8,16], index: 2, kind: input, shape index: {}]   ;;  %s1414_s3 = inlined_call_operand.hbm [shape: f32[8,8,16], index: 3, kind: output, shape index: {0}]   ;;  %s1415_s4 = inlined_call_operand.hbm [shape: f32[8,8,8], index: 4, kind: output, shape index: {1}]  }
   0x1   :  { %1422 = sst [smem:[#allocation21_spill]] %s1412_s1 }
   0x2   :  { %10 = vsyncpa [#allocation3], 0 }
   0x3   :  { %12 = vsyncpa [#allocation3 + $0x1], 0 }
   0x4   :  { %13 = vsyncpa [#allocation6], 0 }
   0x5   :  { %15 = vsyncpa [#allocation6 + $0x1], 0 }
   0x6   :  { %16 = vsyncpa [#allocation4], 0 }
   0x7   :  { %18 = vsyncpa [#allocation4 + $0x1], 0 }
   0x8   :  { %19 = vsyncpa [#allocation10], 0 }
   0x9   :  { %21 = vsyncpa [#allocation10 + $0x1], 0  ;;  %s1195_s15 = smov 0   ;;  %s1197_s16 = smov 0  }
   0xa   :  { %s1199_s17 = smov 0   ;;  %s1201_s18 = smov 0  }
   0xb   :  { %s1203_s19 = smov 0   ;;  %s1205_s20 = smov 0  }
   0xc LB: > { %1423 = sst [smem:[#allocation15_spill]] %s1152_s17  ;;  %s1226_s21 = sadd.s32 4294967295, %s1164_s20   ;;  %s1164_s20 = sphi %s1205_s20, %s27_s20   ;;  %s1160_s19 = sphi %s1203_s19, %s1441_s19   ;;  %s1156_s18 = sphi %s1201_s18, %s1440_s18   ;;  %s1152_s17 = sphi %s1199_s17, %s1439_s17   ;;  %s1148_s16 = sphi %s1197_s16, %s1443_s16   ;;  %s1144_s15 = sphi %s1195_s15, %s1442_s15  }
   0xd   : > { %1424 = sst [smem:[#allocation16_spill]] %s1160_s19  ;;  %s816_s22 = sadd.s32 4294967294, %s1164_s20  }
   0xe   : > { %1425 = sst [smem:[#allocation17_spill]] %s1164_s20  ;;  %s39_s23 = sadd.s32 1, %s1160_s19 }
   0xf   : > { %s48_s24 = sadd.s32 1, %s1152_s17  ;;  %p41_p0 = scmp.ge.s32.totalorder %s39_s23, 2 }
  0x10   : > { %p55_p1 = scmp.ne.s32.totalorder %s1152_s17, %s1148_s16  ;;  %p56_p2 = scmp.eq.s32.totalorder %s1164_s20, 0 }
  0x11   : > { %p61_p3 = scmp.ne.s32.totalorder %s1148_s16, %s1144_s15  ;;  %s1445_s23 = smov (%p41_p0, %s39_s23), 0 }
  0x12   : > { %1426 = sst [smem:[#allocation18_spill]] %s1445_s23  ;;  %p1238_p4 = por %p56_p2, %p55_p1 }
  0x13   : > { %p62_p5 = scmp.eq.s32.totalorder %s1226_s21, 0  ;;  %s43_s26 = ssub.s32 %s1160_s19, %s1445_s23 }
  0x14   : > { %p139_p6 = scmp.eq.s32.totalorder %s1226_s21, 1  ;;  %p46_p7 = scmp.eq.s32.totalorder %s43_s26, 0 }
  0x15   : > { %p1246_p8 = por %p62_p5, %p61_p3  ;;  %p145_p10 = scmp.eq.s32.totalorder %s816_s22, 1 }
  0x16   : > { %p1250_p9 = por %p139_p6, %p55_p1  ;;  %p818_p12 = scmp.ge.s32.totalorder %s1164_s20, 2 }
  0x17   : > { %s1255_s29 = scalar_select %p46_p7, %s1152_s17, %s48_s24  }
  0x18   : > { %p1257_p11 = por %p145_p10, %p61_p3  ;;  %p886_p13 = scmp.lt.s32.totalorder %s1164_s20, 2 }
  0x19   : > { %1430 = sst [smem:[#allocation19_spill]] %s1255_s29  ;;  %s193_s5 = sand.u32 1, %s1152_s17  }
  0x1a   : > { %s1431_s30 = scalar_select %p1257_p11, 1, 0 }
  0x1b   : > { %s1264_s6 = sshll.u32 %s193_s5, 5  ;;  %s854_s7 = sshll.u32 %s1160_s19, 5 }
  0x1c   : > { %1432 = sst [smem:[#allocation20_spill]] %s1431_s30  ;;  %p1269_p0 = pnand %p886_p13, %p1238_p4 }
  0x1d   : > { %s216_s9 = sand.u32 1, %s1164_s20   ;;  %s1434_s1 = sld [smem:[#allocation21_spill]] }
  0x1e   : > { %s220_s14 = scalar_lea.vmem [#allocation5], %s1264_s6  ;;  %s217_s24 = scalar_lea.sflag [#allocation6], %s216_s9 }
  0x1f   : > { %s228_s22 = sshll.u32 %s220_s14, 4  ;;  %s1166_s26 = smov 128   ;;  %s229_s22 = int_to_ptr.vmem [resolvable:$true] %s228_s22 }
  0x20   : > { %s1167_s25 = smov 8   ;;  %p828_p1 = scmp.ge.s32.totalorder %s1164_s20, 1 }
  0x21   : > { %p258_p2 = scmp.lt.s32.totalorder %s1164_s20, 3  ;;  %s194_s9 = scalar_lea.sflag [#allocation3], %s193_s5 }
  0x22   : > { %s247_s29 = scalar_lea.hbm %s1413_s2, %s854_s7  ;;  %s242_s20 = scalar_lea.vmem [#allocation7], %s1264_s6 }
  0x23   : > { %s225_s12 = scalar_lea.hbm %s1434_s1, %s854_s7  ;;  %p1282_p3 = pnand %p828_p1, %p258_p2 }
  0x24   : > { %s226_s13 = sshll.u32 %s225_s12, 4  ;;  %s203_s12 = scalar_lea.hbm %s1411_s0, %s854_s7  ;;  %s227_s13 = int_to_ptr.hbm [resolvable:$true] %s226_s13 }
  0x25   : > { %875 = dma.hbm_to_vmem [thread:$0]  (!%p1269_p0), %s227_s13, 512, %s229_s22, %s217_s24, %s1166_s26, %s1166_s26, %s1167_s25  }
  0x26   : > { %s204_s14 = sshll.u32 %s203_s12, 4  ;;  %s197_s1 = scalar_lea.vmem [#allocation2], %s1264_s6  ;;  %s205_s14 = int_to_ptr.hbm [resolvable:$true] %s204_s14 }
  0x27   : > { %s206_s19 = sshll.u32 %s197_s1, 4  ;;  %s248_s17 = sshll.u32 %s247_s29, 4  ;;  %s207_s19 = int_to_ptr.vmem [resolvable:$true] %s206_s19  ;;  %s249_s17 = int_to_ptr.hbm [resolvable:$true] %s248_s17 }
  0x28   : > { %872 = dma.hbm_to_vmem [thread:$0]  (!%p1269_p0), %s205_s14, 512, %s207_s19, %s194_s9, %s1166_s26, %s1166_s26, %s1167_s25  }
  0x29   : > { %s250_s30 = sshll.u32 %s242_s20, 4  ;;  %262 = sbr.rel (%p1282_p3) target bundleno = 591 (0x24f), region = 32  ;;  %s251_s30 = int_to_ptr.vmem [resolvable:$true] %s250_s30 }
  0x2a   : > { %878 = dma.hbm_to_vmem [thread:$0]  (!%p1269_p0), %s249_s17, 512, %s251_s30, %s217_s24, %s1166_s26, %s1166_s26, %s1167_s25  }
  0x2b   : > { %s1301_s1 = sand.u32 (!%p1282_p3), 1, %s1148_s16  }
  0x2c   : > { %s1304_s19 = sshll.u32 (!%p1282_p3), %s1301_s1, 5  ;;  %s265_s5 = scalar_lea.sflag (!%p1282_p3), [#allocation3], %s1301_s1 }
  0x2d   : > { %s268_s29 = scalar_lea.vmem (!%p1282_p3), [#allocation2], %s1304_s19 }
  0x2e   : > { %1127 = dma.done.wait (%p1246_p8), %s265_s5, 512  }
  0x2f   : > { %1129 = vsyncadd (%p1246_p8), %s265_s5, 4294966784  ;;  %s274_s17 = sand.u32 1, %s1226_s21   ;;  %s278_s23 = scalar_lea.vmem [#allocation5], %s1304_s19 }
  0x30   : > { %s275_s20 = scalar_lea.sflag [#allocation6], %s274_s17 }
  0x31   : > { %1131 = dma.done.wait (%p1246_p8), %s275_s20, 1024  }
  0x32   : > { %1133 = vsyncadd (%p1246_p8), %s275_s20, 4294966272  ;;  %vm342_vm0 = vcmask 130048   ;;  %v338_v0 = vld [vmem:[%s278_s23] sm:$0xff]  ;;  %v340_v1 = vld [vmem:[%s278_s23 + $0x10] sm:$0xff]  ;;  %vm451_vm1 = vcmask 64512   ;;  %s288_s21 = scalar_lea.vmem [#allocation7], %s1304_s19 }
  0x33   : > { %v334_v2 = vld [vmem:[%s268_s29] sm:$0xff]  ;;  %834 = vmatpush.xpose.msk.msra.mxu0 %vm342_vm0, %v338_v0  ;;  %838 = vmatpush.xpose.msk.msra.mxu2 %vm342_vm0, %v340_v1  ;;  %v336_v3 = vld [vmem:[%s268_s29 + $0x10] sm:$0xff]  ;;  %v339_v4 = vld [vmem:[%s278_s23 + $0x8] sm:$0xff]  ;;  %s328_s27 = scalar_lea.vmem [#allocation9], %s1304_s19  ;;  %s857_s30 = sshll.u32 %s1156_s18, 5 }
  0x34   : > { %v341_v5 = vld [vmem:[%s278_s23 + $0x18] sm:$0xff]  ;;  %836 = vmatpush.xpose.msk.msra.mxu1 %vm342_vm0, %v339_v4  ;;  %v335_v6 = vld [vmem:[%s268_s29 + $0x8] sm:$0xff]  ;;  %v512_v40 = vld [vmem:[%s288_s21] sm:$0xff]  ;;  %s649_s6 = sshll.u32 %s328_s27, 4  ;;  %s648_s24 = scalar_lea.hbm %s1415_s4, %s857_s30  ;;  %s650_s6 = int_to_ptr.vmem [resolvable:$true] %s649_s6 }
  0x35   : > { %840 = vmatpush.xpose.msk.msra.mxu3 %vm342_vm0, %v341_v5  ;;  %v337_v7 = vld [vmem:[%s268_s29 + $0x18] sm:$0xff]  ;;  %v514_v41 = vld [vmem:[%s288_s21 + $0x10] sm:$0xff]  ;;  %v513_v42 = vld [vmem:[%s288_s21 + $0x8] sm:$0xff]  ;;  %s651_s26 = sshll.u32 %s648_s24, 4  ;;  %s618_s25 = scalar_lea.sflag [#allocation10], %s1301_s1  ;;  %s652_s26 = int_to_ptr.hbm [resolvable:$true] %s651_s26 }
  0x36   : > { %835 = vmatmul.msk.f32.vlgmr.msra.gmra.mxu0 %vm342_vm0, %v334_v2  ;;  %839 = vmatmul.msk.f32.vlgmr.msra.gmra.mxu2 %vm342_vm0, %v336_v3  ;;  %v515_v43 = vld [vmem:[%s288_s21 + $0x18] sm:$0xff]  ;;  %s1060_s10 = sshra.s32 %s652_s26, 4  ;;  %s1066_s9 = scalar_lea.hbm %s1415_s4, 64  ;;  %s1061_s10 = int_to_ptr.hbm [resolvable:$true] %s1060_s10 }
  0x37   : > { %837 = vmatmul.msk.f32.vlgmr.msra.gmra.mxu1 %vm342_vm0, %v335_v6  ;;  %534 = vmatpush.msrb.mxu0 %v512_v40  ;;  %s1062_s11 = scalar_lea.hbm %s1061_s10, 32  ;;  %p1067_p7 = scmp.lt.s32.totalorder %s1061_s10, %s1415_s4 }
  0x38   : > { %841 = vmatmul.msk.f32.vlgmr.msra.gmra.mxu3 %vm342_vm0, %v337_v7  ;;  %580 = vmatpush.msrb.mxu2 %v514_v41  ;;  %p1063_p4 = scmp.ne.s32.totalorder %s1061_s10, %s1062_s11  ;;  %p1068_p8 = scmp.lt.s32.totalorder %s1066_s9, %s1062_s11 }
  0x39   : > { %557 = vmatpush.msrb.mxu1 %v513_v42  ;;  %603 = vmatpush.msrb.mxu3 %v515_v43 }
  0x3a   : > { %p1064_p5 = pnand %p1063_p4, %p1250_p9  ;;  %p1069_p10 = por %p1068_p8, %p1067_p7 }
  0x3c   : > { %p1065_p6 = pneg %p1064_p5 }
  0x3e   : > { %p1070_p13 = pnand %p1069_p10, %p1065_p6 }
  0xb3   : > { %v366_v8 = vpop.f32.mrf.mxu0 }
  0xb4   : > { %v447_v9 = vmul.f32 0.25, %v366_v8  ;;  %v392_v10 = vpop.f32.mrf.mxu1 }
  0xb5   : > { %v448_v12 = vmul.f32 0.25, %v392_v10 }
  0xb6   : > { %v452_v11 = vsel %vm451_vm1, %v447_v9, -inf }
  0xb7   : > { %453 = vmax.xlane.f32.xlu1 %v452_v11  ;;  %v455_v17 = vsel %vm451_vm1, %v448_v12, -inf }
  0xb9   : > { %v418_v13 = vpop.f32.mrf.mxu2 }
  0xba   : > { %v449_v14 = vmul.f32 0.25, %v418_v13 }
  0xbb   : > { %v444_v15 = vpop.f32.mrf.mxu3 }
  0xbc   : > { %v458_v16 = vsel %vm451_vm1, %v449_v14, -inf  ;;  %v450_v18 = vmul.f32 0.25, %v444_v15 }
  0xbd   : > { %459 = vmax.xlane.f32.xlu0 %v458_v16 }
  0xbe   : > { %v461_v19 = vsel %vm451_vm1, %v450_v18, -inf }
  0xbf   : > { %456 = vmax.xlane.f32.xlu1 %v455_v17 }
  0xc5   : > { %462 = vmax.xlane.f32.xlu0 %v461_v19 }
 0x12a   : > { %v454_v20 = vpop.xlane.xlu1 %453 }
 0x12b   : > { %v464_v21 = vsub.f32 %v447_v9, %v454_v20 }
 0x12d   : > { %v468_v22 = vmul.f32 1.442695, %v464_v21 }
 0x12f   : > { %940 = vpow2.f32 %v468_v22 }
 0x130   : > { %v460_v23 = vpop.xlane.xlu0 %459 }
 0x131   : > { %v466_v24 = vsub.f32 %v449_v14, %v460_v23 }
 0x132   : > { %v457_v25 = vpop.xlane.xlu1 %456 }
 0x133   : > { %v472_v26 = vmul.f32 1.442695, %v466_v24  ;;  %v465_v27 = vsub.f32 %v448_v12, %v457_v25 }
 0x135   : > { %v941_v28 = vpop.eup %940  ;;  %942 = vpow2.f32 %v472_v26  ;;  %v470_v29 = vmul.f32 1.442695, %v465_v27 }
 0x136   : > { %v476_v30 = vsel %vm451_vm1, %v941_v28, 0.0 }
 0x137   : > { %944 = vpow2.f32 %v470_v29  ;;  %477 = vadd.xlane.f32.xlu0 %v476_v30 }
 0x138   : > { %v463_v31 = vpop.xlane.xlu0 %462 }
 0x139   : > { %v467_v32 = vsub.f32 %v450_v18, %v463_v31 }
 0x13b   : > { %v943_v33 = vpop.eup %942  ;;  %v474_v34 = vmul.f32 1.442695, %v467_v32 }
 0x13c   : > { %v482_v35 = vsel %vm451_vm1, %v943_v33, 0.0 }
 0x13d   : > { %v945_v36 = vpop.eup %944  ;;  %946 = vpow2.f32 %v474_v34  ;;  %483 = vadd.xlane.f32.xlu2 %v482_v35 }
 0x13e   : > { %v479_v37 = vsel %vm451_vm1, %v945_v36, 0.0 }
 0x13f   : > { %480 = vadd.xlane.f32.xlu1 %v479_v37 }
 0x143   : > { %v947_v38 = vpop.eup %946 }
 0x144   : > { %v485_v39 = vsel %vm451_vm1, %v947_v38, 0.0 }
 0x145   : > { %486 = vadd.xlane.f32.xlu2 %v485_v39 }
 0x1aa   : > { %v478_v44 = vpop.xlane.xlu0 %477 }
 0x1ab   : > { %948 = vrcp.f32 %v478_v44 }
 0x1b0   : > { %v484_v45 = vpop.xlane.xlu2 %483 }
 0x1b1   : > { %v949_v46 = vpop.eup %948  ;;  %950 = vrcp.f32 %v484_v45 }
 0x1b2   : > { %v492_v47 = vmul.f32 %v949_v46, %v478_v44  ;;  %v481_v48 = vpop.xlane.xlu1 %480 }
 0x1b3   : > { %952 = vrcp.f32 %v481_v48 }
 0x1b4   : > { %v496_v49 = vsub.f32 2.0, %v492_v47 }
 0x1b6   : > { %v500_v50 = vmul.f32 %v949_v46, %v496_v49 }
 0x1b7   : > { %v951_v51 = vpop.eup %950 }
 0x1b8   : > { %v504_v52 = vmul.f32 %v941_v28, %v500_v50  ;;  %v494_v53 = vmul.f32 %v951_v51, %v484_v45  ;;  %v487_v54 = vpop.xlane.xlu2 %486 }
 0x1b9   : > { %v953_v55 = vpop.eup %952  ;;  %954 = vrcp.f32 %v487_v54 }
 0x1ba   : > { %508 = vst.msk [vmem:[%s328_s27] sm:$0xff] %vm451_vm1, %v504_v52  ;;  %v498_v56 = vsub.f32 2.0, %v494_v53  ;;  %v493_v57 = vmul.f32 %v953_v55, %v481_v48  ;;  %842 = vmatmul.msk.f32.vlgmr.msrb.gmra.mxu0 %vm451_vm1, %v504_v52 }
 0x1bc   : > { %v502_v58 = vmul.f32 %v951_v51, %v498_v56  ;;  %v497_v59 = vsub.f32 2.0, %v493_v57 }
 0x1be   : > { %v506_v60 = vmul.f32 %v943_v33, %v502_v58  ;;  %v501_v61 = vmul.f32 %v953_v55, %v497_v59 }
 0x1bf   : > { %v955_v62 = vpop.eup %954 }
 0x1c0   : > { %510 = vst.msk [vmem:[%s328_s27 + $0x10] sm:$0xff] %vm451_vm1, %v506_v60  ;;  %v505_v63 = vmul.f32 %v945_v36, %v501_v61  ;;  %v495_v0 = vmul.f32 %v955_v62, %v487_v54  ;;  %844 = vmatmul.msk.f32.vlgmr.msrb.gmra.mxu2 %vm451_vm1, %v506_v60 }
 0x1c2   : > { %509 = vst.msk [vmem:[%s328_s27 + $0x8] sm:$0xff] %vm451_vm1, %v505_v63  ;;  %v499_v1 = vsub.f32 2.0, %v495_v0  ;;  %843 = vmatmul.msk.f32.vlgmr.msrb.gmra.mxu1 %vm451_vm1, %v505_v63 }
 0x1c4   : > { %v503_v2 = vmul.f32 %v955_v62, %v499_v1 }
 0x1c6   : > { %v507_v3 = vmul.f32 %v947_v38, %v503_v2 }
 0x1c8   : > { %511 = vst.msk [vmem:[%s328_s27 + $0x18] sm:$0xff] %vm451_vm1, %v507_v3  ;;  %845 = vmatmul.msk.f32.vlgmr.msrb.gmra.mxu3 %vm451_vm1, %v507_v3 }
 0x1c9   : > { %1073 = shalt.err (!%p1070_p13)
}
 0x1ca   : > { %s1168_s5 = smov 128   ;;  %s1169_s29 = smov 8  }
 0x1cb   : > { %866 = dma.vmem_to_hbm [thread:$0]  (%p1250_p9), %s650_s6, 512, %s652_s26, %s618_s25, %s1168_s5, %s1168_s5, %s1169_s29  }
 0x1cc   : > { %s321_s17 = scalar_lea.vmem [#allocation8], %s1304_s19  ;;  %s630_s21 = scalar_lea.hbm %s1414_s3, %s857_s30 }
 0x1cd   : > { %s631_s27 = sshll.u32 %s321_s17, 4  ;;  %s633_s7 = sshll.u32 %s630_s21, 4  ;;  %s632_s27 = int_to_ptr.vmem [resolvable:$true] %s631_s27  ;;  %s634_s7 = int_to_ptr.hbm [resolvable:$true] %s633_s7 }
 0x1ce   : > { %s613_s19 = scalar_lea.sflag [#allocation4], %s1301_s1  ;;  %s1088_s6 = sshra.s32 %s634_s7, 4  ;;  %s1089_s6 = int_to_ptr.hbm [resolvable:$true] %s1088_s6 }
 0x1cf   : > { %s1090_s8 = scalar_lea.hbm %s1089_s6, 32  ;;  %s1094_s26 = scalar_lea.hbm %s1414_s3, 64 }
 0x1d0   : > { %p1091_p0 = scmp.ne.s32.totalorder %s1089_s6, %s1090_s8  ;;  %p1095_p3 = scmp.lt.s32.totalorder %s1089_s6, %s1414_s3 }
 0x1d1   : > { %p1096_p4 = scmp.lt.s32.totalorder %s1094_s26, %s1090_s8 }
 0x1d2   : > { %p1092_p1 = pnand %p1091_p0, %p1250_p9 }
 0x1d3   : > { %p1097_p5 = por %p1096_p4, %p1095_p3 }
 0x1d4   : > { %p1093_p2 = pneg %p1092_p1 }
 0x1d6   : > { %p1098_p6 = pnand %p1097_p5, %p1093_p2 }
 0x237   : > { %v536_v4 = vpop.f32.mrf.mxu0 }
 0x238   : > { %608 = vst.msk [vmem:[%s321_s17] sm:$0xff] %vm342_vm0, %v536_v4 }
 0x23f   : > { %v559_v5 = vpop.f32.mrf.mxu1 }
 0x240   : > { %609 = vst.msk [vmem:[%s321_s17 + $0x8] sm:$0xff] %vm342_vm0, %v559_v5 }
 0x243   : > { %v582_v6 = vpop.f32.mrf.mxu2 }
 0x244   : > { %610 = vst.msk [vmem:[%s321_s17 + $0x10] sm:$0xff] %vm342_vm0, %v582_v6 }
 0x24b   : > { %v605_v7 = vpop.f32.mrf.mxu3 }
 0x24c   : > { %611 = vst.msk [vmem:[%s321_s17 + $0x18] sm:$0xff] %vm342_vm0, %v605_v7 }
 0x24d   : > { %1101 = shalt.err (!%p1098_p6)
}
 0x24e   : > { %865 = dma.vmem_to_hbm [thread:$0]  (%p1250_p9), %s632_s27, 512, %s634_s7, %s613_s19, %s1168_s5, %s1168_s5, %s1169_s29  }
 0x24f PF: > { %s1437_s10 = sld [smem:[#allocation17_spill]]  ;;  %s666_s11 = sand.u32 1, %s1144_s15  }
 0x250   : > { %p880_p7 = pnand %p818_p12, %p1257_p11  ;;  %s667_s12 = scalar_lea.sflag [#allocation4], %s666_s11 }
 0x252   : > { %p881_p8 = pneg %p880_p7 }
 0x254   : > { %1135 = dma.done.wait (%p881_p8), %s667_s12, 512  }
 0x255   : > { %1137 = vsyncadd (%p881_p8), %s667_s12, 4294966784  ;;  %s677_s14 = scalar_lea.sflag [#allocation10], %s666_s11 }
 0x256   : > { %1139 = dma.done.wait (%p881_p8), %s677_s14, 512  }
 0x257   : > { %1141 = vsyncadd (%p881_p8), %s677_s14, 4294966784  ;;  %s27_s20 = sadd.s32 1, %s1437_s10   ;;  %s1438_s28 = sld [smem:[#allocation15_spill]] }
 0x258   : > { %p24_p10 = scmp.ge.s32.totalorder %s27_s20, 4   ;;  %s1439_s17 = sld [smem:[#allocation19_spill]] }
 0x259   : > { %s1440_s18 = sld [smem:[#allocation16_spill]]  ;;  %s1442_s15 = smov %s1148_s16 }
 0x25a   : > { %s1441_s19 = sld [smem:[#allocation18_spill]]  ;;  %26 = sbr.rel (!%p24_p10) target bundleno = 12 (0xc), region = 118 }
 0x25d   : > { %s1443_s16 = smov %s1438_s28 }
 0x25f   :  { %683 = vsyncpa [#allocation3], 1 }
 0x260   :  { %685 = vsyncpa [#allocation3 + $0x1], 1 }
 0x261   :  { %686 = vsyncpa [#allocation6], 1 }
 0x262   :  { %688 = vsyncpa [#allocation6 + $0x1], 1 }
 0x263   :  { %689 = vsyncpa [#allocation4], 1 }
 0x264   :  { %691 = vsyncpa [#allocation4 + $0x1], 1 }
 0x265   :  { %692 = vsyncpa [#allocation10], 1 }
 0x266   :  { %694 = vsyncpa [#allocation10 + $0x1], 1 }

</bundles_post_ra>
